<compile_context>
chip_gen: v5e
topology: v5e:2x2
jax: 0.10.0
libtpu: 0.0.40
codegen_flags: <defaults>
</compile_context>

<pallas_src>
import functools
import math

import jax
import jax.numpy as jnp
from jax.experimental import pallas as pl
from jax.experimental.pallas import tpu as pltpu


# ----------------------------------------------------------------------------
# Small helpers.
# ----------------------------------------------------------------------------
def _round_up(a: int, b: int) -> int:
    return -(-a // b) * b


def _cdiv(a: int, b: int) -> int:
    return -(-a // b)


def _sublane_pack(dtype) -> int:
    """Sublanes per packed vreg row: f32 -> 8, bf16 -> 16, int8/fp8 -> 32."""
    itemsize = jnp.dtype(dtype).itemsize
    if itemsize >= 4:
        return 8
    return 8 * (4 // itemsize)


def _vmem_capacity_bytes() -> int:
    try:
        return int(pltpu.get_tpu_info().vmem_capacity_bytes)
    except Exception:
        return 64 * 1024 * 1024  # conservative: assume v7x-class per-TC VMEM


def _tuning():
    """Per-generation block-size targets and scoped-VMEM limits."""
    cap = _vmem_capacity_bytes()
    if cap >= 100 * 1024 * 1024:
        # v5e / v6e: 128 MiB physical VMEM -> bigger blocks, bigger DMA bursts.
        return dict(cap=cap, target=6 << 20, budget=48 << 20, limit=64 << 20)
    # v7x-class: 64 MiB physical per TC -> stay modest.
    return dict(cap=cap, target=2 << 20, budget=20 << 20, limit=32 << 20)


def _taylor_coeffs(n: int):
    """Coefficients c_i = 1/i! of fn(x) = sum_{i=0..n} x**i / i!."""
    return tuple(1.0 / math.factorial(i) for i in range(n + 1))


def _poly_horner(x, coeffs):
    """Evaluate sum_i coeffs[i] * x**i in Horner form (len(coeffs) >= 3)."""
    fn = coeffs[-1] * x + coeffs[-2]
    for c in coeffs[-3::-1]:
        fn = fn * x + c
    return fn


def _normalize(fn, denom):
    """fn / denom via EUP reciprocal + one Newton step (~f32 accuracy)."""
    r = pl.reciprocal(denom, approx=True)
    r = r * (2.0 - denom * r)
    return fn * r


# ----------------------------------------------------------------------------
# Primary path: x reshaped to (N, C, T) — reduction axis C is second-minor
# (sublane), the large spatial extent T sits lane-dense. C is NEVER tiled.
# ----------------------------------------------------------------------------
def _kernel_nct(x_ref, o_ref, *, coeffs):
    x = x_ref[...].astype(jnp.float32)            # (bn, C, tile_t)
    fn = _poly_horner(x, coeffs)
    denom = jnp.sum(fn, axis=1, keepdims=True)    # reduce over C (sublane axis)
    o_ref[...] = _normalize(fn, denom).astype(o_ref.dtype)


def _taylor_softmax_nct(x3: jax.Array, coeffs) -> jax.Array:
    N, C, T = x3.shape
    dtype = x3.dtype
    itemsize = jnp.dtype(dtype).itemsize
    pack = _sublane_pack(dtype)
    tune = _tuning()
    target, budget = tune["target"], tune["budget"]

    p_c_io = _round_up(C, pack)   # sublane-padded C in the I/O dtype
    p_c_f32 = _round_up(C, 8)     # sublane-padded C for f32 intermediates

    # Lane-dense spatial tile (multiple of 128). Boundary block is masked;
    # safe because the reduction axis (C) is never ragged.
    max_t = max(128, (target // max(1, p_c_io * itemsize)) // 128 * 128)
    tile_t = min(_round_up(T, 128), max_t)

    # Batch samples per grid step when per-sample blocks are small, to
    # amortize per-step overhead and make bigger DMA bursts.
    block_bytes = p_c_io * tile_t * itemsize
    bn = max(1, min(N, target // max(1, block_bytes)))

    # Keep >= 2 grid steps when possible so megacore can shard the grid.
    if _cdiv(T, tile_t) == 1 and bn >= N and N > 1:
        bn = max(1, N // 2)

    def vmem_estimate(bn_, tt_):
        io = bn_ * p_c_io * tt_ * itemsize       # one in/out buffer
        f32 = bn_ * p_c_f32 * tt_ * 4            # x_f32 / fn intermediates
        return 4 * io + (5 * f32) // 2           # 2x in + 2x out + ~2.5x f32

    while vmem_estimate(bn, tile_t) > budget:
        if bn > 1:
            bn = max(1, bn // 2)
        elif tile_t > 128:
            tile_t = max(128, (tile_t // 2) // 128 * 128)
        else:
            break

    vmem_limit = max(tune["limit"],
                     min(vmem_estimate(bn, tile_t) + (4 << 20),
                         tune["cap"] * 7 // 8))

    grid = (_cdiv(N, bn), _cdiv(T, tile_t))
    return pl.pallas_call(
        functools.partial(_kernel_nct, coeffs=coeffs),
        out_shape=jax.ShapeDtypeStruct((N, C, T), dtype),
        grid_spec=pltpu.PrefetchScalarGridSpec(
            num_scalar_prefetch=0,
            grid=grid,
            in_specs=[pl.BlockSpec((bn, C, tile_t), lambda i, j: (i, 0, j))],
            out_specs=pl.BlockSpec((bn, C, tile_t), lambda i, j: (i, 0, j)),
        ),
        compiler_params=pltpu.CompilerParams(
            dimension_semantics=("parallel", "parallel"),
            vmem_limit_bytes=int(vmem_limit),
        ),
    )(x3)


# ----------------------------------------------------------------------------
# Fallback path (reduction axis is the last axis, e.g. dim == -1): rows on
# the sublane axis, C lane-dense. C (full extent) is never tiled.
# ----------------------------------------------------------------------------
def _kernel_rows(x_ref, o_ref, *, coeffs):
    x = x_ref[...].astype(jnp.float32)            # (tile_r, C)
    fn = _poly_horner(x, coeffs)
    denom = jnp.sum(fn, axis=-1, keepdims=True)
    o_ref[...] = _normalize(fn, denom).astype(o_ref.dtype)


def _taylor_softmax_rows(x2: jax.Array, coeffs) -> jax.Array:
    R, C = x2.shape
    dtype = x2.dtype
    itemsize = jnp.dtype(dtype).itemsize
    pack = _sublane_pack(dtype)
    tune = _tuning()
    target, budget = tune["target"], tune["budget"]

    p_c_lanes = _round_up(C, 128)
    row_io = p_c_lanes * itemsize
    row_f32 = p_c_lanes * 4

    # Rows per block, rounded to the dtype's sublane packing (16 for bf16, …).
    tile_r = max(pack, (target // max(1, row_io)) // pack * pack)
    tile_r = min(tile_r, _round_up(R, pack))

    def vmem_estimate(tr):
        return 4 * tr * row_io + (5 * tr * row_f32) // 2

    while vmem_estimate(tile_r) > budget and tile_r > pack:
        tile_r = max(pack, (tile_r // 2) // pack * pack)

    vmem_limit = max(tune["limit"],
                     min(vmem_estimate(tile_r) + (4 << 20),
                         tune["cap"] * 7 // 8))

    grid = (_cdiv(R, tile_r),)
    return pl.pallas_call(
        functools.partial(_kernel_rows, coeffs=coeffs),
        out_shape=jax.ShapeDtypeStruct((R, C), dtype),
        grid_spec=pltpu.PrefetchScalarGridSpec(
            num_scalar_prefetch=0,
            grid=grid,
            in_specs=[pl.BlockSpec((tile_r, C), lambda i: (i, 0))],
            out_specs=pl.BlockSpec((tile_r, C), lambda i: (i, 0)),
        ),
        compiler_params=pltpu.CompilerParams(
            dimension_semantics=("parallel",),
            vmem_limit_bytes=int(vmem_limit),
        ),
    )(x2)


# ----------------------------------------------------------------------------
# Public wrapper matching the PyTorch module forward.
# ----------------------------------------------------------------------------
def taylor_softmax(x: jax.Array, dim: int = 1, n: int = 2) -> jax.Array:
    """TaylorSoftmax over `dim` (matches the PyTorch module forward)."""
    assert n % 2 == 0 and n >= 2
    coeffs = _taylor_coeffs(n)
    ndim = x.ndim
    dim = dim % ndim
    shape = x.shape
    C = shape[dim]
    lead = math.prod(shape[:dim])
    trail = math.prod(shape[dim + 1:])

    if trail > 1:
        # Free reshape (no transpose): reduction axis stays second-minor,
        # large trailing extent goes lane-dense.
        x3 = x.reshape(lead, C, trail)
        out3 = _taylor_softmax_nct(x3, coeffs)
        return out3.reshape(shape)
    else:
        x2 = x.reshape(lead, C)
        out2 = _taylor_softmax_rows(x2, coeffs)
        return out2.reshape(shape)


def _reference(x: jax.Array, dim: int = 1, n: int = 2) -> jax.Array:
    """Pure-JAX reference mirroring the PyTorch forward."""
    fn = jnp.ones_like(x)
    denor = 1.0
    for i in range(1, n + 1):
        denor *= i
        fn = fn + jnp.power(x, i) / denor
    return fn / jnp.sum(fn, axis=dim, keepdims=True)


if __name__ == "__main__":
    key = jax.random.PRNGKey(0)
    # NCHW input consistent with the module docstring usage.
    x = jax.random.normal(key, (2, 4, 16, 16), dtype=jnp.float32)

    out = taylor_softmax(x, dim=1, n=2)
    out = jax.block_until_ready(out)

    ref = _reference(x, dim=1, n=2)
    assert out.shape == x.shape
    assert jnp.allclose(out, ref, atol=1e-5, rtol=1e-5), "mismatch vs reference"

    print("KERNEL_OK")
</pallas_src>

<mosaic_0001>
module attributes {stable_mosaic.version = 11 : i64} {
  func.func @_kernel_nct(%arg0: i32, %arg1: i32, %arg2: memref<1x4x256xf32, #tpu.memory_space<vmem>>, %arg3: memref<1x4x256xf32, #tpu.memory_space<vmem>>) attributes {dimension_semantics = [#tpu.dimension_semantics<parallel>, #tpu.dimension_semantics<parallel>], iteration_bounds = array<i64: 2, 1>, scalar_prefetch = 0 : i64, scratch_operands = 0 : i64, tpu.core_type = #tpu.core_type<tc>, window_params = [{transform_indices = @transform_0, window_bounds = array<i64: 1, 4, 256>}, {transform_indices = @transform_1, window_bounds = array<i64: 1, 4, 256>}]} {
    %c0 = arith.constant 0 : index
    %c0_0 = arith.constant 0 : index
    %c0_1 = arith.constant 0 : index
    %0 = vector.load %arg2[%c0, %c0_0, %c0_1] : memref<1x4x256xf32, #tpu.memory_space<vmem>>, vector<1x4x256xf32>
    %cst = arith.constant 5.000000e-01 : f32
    %1 = vector.broadcast %cst : f32 to vector<1x4x256xf32>
    %2 = arith.mulf %1, %0 : vector<1x4x256xf32>
    %cst_2 = arith.constant 1.000000e+00 : f32
    %3 = vector.broadcast %cst_2 : f32 to vector<1x4x256xf32>
    %4 = arith.addf %2, %3 : vector<1x4x256xf32>
    %5 = arith.mulf %4, %0 : vector<1x4x256xf32>
    %cst_3 = arith.constant 1.000000e+00 : f32
    %6 = vector.broadcast %cst_3 : f32 to vector<1x4x256xf32>
    %7 = arith.addf %5, %6 : vector<1x4x256xf32>
    %cst_4 = arith.constant dense<0.000000e+00> : vector<1x256xf32>
    %8 = vector.multi_reduction <add>, %7, %cst_4 [1] : vector<1x4x256xf32> to vector<1x256xf32>
    %9 = vector.shape_cast %8 : vector<1x256xf32> to vector<1x1x256xf32>
    %10 = tpu.reciprocal %9 {approx = true} : vector<1x1x256xf32> -> vector<1x1x256xf32>
    %11 = arith.mulf %9, %10 : vector<1x1x256xf32>
    %cst_5 = arith.constant 2.000000e+00 : f32
    %12 = vector.broadcast %cst_5 : f32 to vector<1x1x256xf32>
    %13 = arith.subf %12, %11 : vector<1x1x256xf32>
    %14 = arith.mulf %10, %13 : vector<1x1x256xf32>
    %15 = vector.broadcast %14 : vector<1x1x256xf32> to vector<1x4x256xf32>
    %16 = arith.mulf %7, %15 : vector<1x4x256xf32>
    %c0_6 = arith.constant 0 : index
    %c0_7 = arith.constant 0 : index
    %c0_8 = arith.constant 0 : index
    %17 = vector.load %arg3[%c0_6, %c0_7, %c0_8] : memref<1x4x256xf32, #tpu.memory_space<vmem>>, vector<1x4x256xf32>
    tpu.vector_store %arg3[%c0_6, %c0_7, %c0_8], %16 {strides = array<i32>} : memref<1x4x256xf32, #tpu.memory_space<vmem>>, vector<1x4x256xf32>,
    return
  }
  func.func @transform_0(%arg0: i32, %arg1: i32) -> (i32, i32, i32) {
    %c0_i32 = arith.constant 0 : i32
    %c0_i32_0 = arith.constant 0 : i32
    return %arg0, %c0_i32, %arg1 : i32, i32, i32
  }
  func.func @transform_1(%arg0: i32, %arg1: i32) -> (i32, i32, i32) {
    %c0_i32 = arith.constant 0 : i32
    %c0_i32_0 = arith.constant 0 : i32
    return %arg0, %c0_i32, %arg1 : i32, i32, i32
  }
}

</mosaic_0001>

<bundles_post_ra>
// kernel: tpu_custom_call.1
= control target key start
LH: loop header
LB: loop body
LE: loop exit
PB: predicated region body
PF: predicated region fallthrough
CT: control target
= control target key end

     0   :  { %6 = vsyncpa [#allocation3], 0  ;;  %s633_s0 = inlined_call_operand.hbm [shape: f32[2,4,256], index: 0, kind: input, shape index: {}]   ;;  %s634_s1 = inlined_call_operand.hbm [shape: f32[2,4,256], index: 1, kind: output, shape index: {}]  }
   0x1   :  { %8 = vsyncpa [#allocation3 + $0x1], 0 }
   0x2   :  { %9 = vsyncpa [#allocation4], 0 }
   0x3   :  { %11 = vsyncpa [#allocation4 + $0x1], 0  ;;  %s506_s6 = smov 0   ;;  %s508_s7 = smov 0  }
   0x4   :  { %s510_s8 = smov 0   ;;  %s512_s9 = smov 0  }
   0x5   :  { %s514_s10 = smov 0   ;;  %s516_s11 = smov 0  }
   0x6 LB: > { %s299_s12 = sadd.s32 4294967295, %s494_s11   ;;  %s300_s13 = sadd.s32 4294967294, %s494_s11   ;;  %s494_s11 = sphi %s516_s11, %s17_s11   ;;  %s490_s10 = sphi %s514_s10, %s643_s10   ;;  %s486_s9 = sphi %s512_s9, %s642_s9   ;;  %s482_s8 = sphi %s510_s8, %s641_s8   ;;  %s478_s7 = sphi %s508_s7, %s640_s7   ;;  %s474_s6 = sphi %s506_s6, %s639_s6  }
   0x7   : > { %s29_s14 = sadd.s32 1, %s490_s10  ;;  %s38_s15 = sadd.s32 1, %s482_s8 }
   0x8   : > { %p31_p0 = scmp.ge.s32.totalorder %s29_s14, 2  ;;  %p45_p1 = scmp.ne.s32.totalorder %s482_s8, %s478_s7 }
   0x9   : > { %p46_p2 = scmp.eq.s32.totalorder %s494_s11, 0  ;;  %p51_p3 = scmp.ne.s32.totalorder %s478_s7, %s474_s6 }
   0xa   : > { %s645_s14 = smov (%p31_p0, %s29_s14), 0  ;;  %p52_p5 = scmp.eq.s32.totalorder %s299_s12, 0 }
   0xb   : > { %p547_p4 = por %p46_p2, %p45_p1  ;;  %s33_s17 = ssub.s32 %s490_s10, %s645_s14 }
   0xc   : > { %p77_p6 = scmp.eq.s32.totalorder %s299_s12, 1  ;;  %p36_p7 = scmp.eq.s32.totalorder %s33_s17, 0 }
   0xd   : > { %p553_p8 = por %p52_p5, %p51_p3  ;;  %p83_p10 = scmp.eq.s32.totalorder %s300_s13, 1 }
   0xe   : > { %p557_p9 = por %p77_p6, %p45_p1  ;;  %p302_p12 = scmp.ge.s32.totalorder %s494_s11, 2 }
   0xf   : > { %s562_s20 = scalar_select %p36_p7, %s482_s8, %s38_s15  }
  0x10   : > { %p564_p11 = por %p83_p10, %p51_p3  ;;  %p328_p13 = scmp.lt.s32.totalorder %s494_s11, 2 }
  0x11   : > { %s103_s22 = sand.u32 1, %s482_s8   ;;  %s314_s24 = sshll.u32 %s490_s10, 3 }
  0x12   : > { %s303_s23 = sshll.u32 %s103_s22, 3  ;;  %s114_s27 = scalar_lea.hbm %s633_s0, %s314_s24 }
  0x13   : > { %s107_s28 = scalar_lea.vmem [#allocation2], %s303_s23  ;;  %s116_s30 = sshll.u32 %s114_s27, 4  ;;  %s117_s30 = int_to_ptr.hbm [resolvable:$true] %s116_s30 }
  0x14   : > { %s118_s29 = sshll.u32 %s107_s28, 4  ;;  %p321_p0 = pnand %p328_p13, %p547_p4  ;;  %s119_s29 = int_to_ptr.vmem [resolvable:$true] %s118_s29 }
  0x15   : > { %p306_p1 = scmp.ge.s32.totalorder %s494_s11, 1  ;;  %p123_p2 = scmp.lt.s32.totalorder %s494_s11, 3 }
  0x16   : > { %s104_s2 = scalar_lea.sflag [#allocation3], %s103_s22 }
  0x17   : > { %323 = dma.hbm_to_vmem [thread:$0]  (!%p321_p0), %s117_s30, 128, %s119_s29, %s104_s2  }
  0x18   : > { %p124_p3 = pnand %p306_p1, %p123_p2 }
  0x19   : > { %s580_s3 = sand.u32 (!%p124_p3), 1, %s478_s7  }
  0x1a   : > { %127 = sbr.rel (%p124_p3) target bundleno = 84 (0x54), region = 24  ;;  %s307_s4 = sshll.u32 (!%p124_p3), %s580_s3, 3 }
  0x1b   : > { %s130_s5 = scalar_lea.sflag (!%p124_p3), [#allocation3], %s580_s3  ;;  %s133_s12 = scalar_lea.vmem (!%p124_p3), [#allocation2], %s307_s4 }
  0x1f   : > { %465 = dma.done.wait (%p553_p8), %s130_s5, 128  }
  0x20   : > { %467 = vsyncadd (%p553_p8), %s130_s5, 4294967168  ;;  %v155_v0 = vld [vmem:[%s133_s12] sm:$0xff]  ;;  %vm166_vm0 = vcmask 1043456   ;;  %s315_s13 = sshll.u32 %s486_s9, 3  ;;  %s152_s18 = scalar_lea.vmem [#allocation5], %s307_s4 }
  0x21   : > { %v156_v1 = vmul.f32 0.5, %v155_v0  ;;  %s210_s17 = scalar_lea.hbm %s634_s1, %s315_s13  ;;  %s212_s22 = sshll.u32 %s152_s18, 4  ;;  %s213_s22 = int_to_ptr.vmem [resolvable:$true] %s212_s22 }
  0x22   : > { %s214_s23 = sshll.u32 %s210_s17, 4  ;;  %s197_s9 = scalar_lea.sflag [#allocation4], %s580_s3  ;;  %s215_s23 = int_to_ptr.hbm [resolvable:$true] %s214_s23 }
  0x23   : > { %v157_v2 = vadd.f32 1.0, %v156_v1  ;;  %s426_s24 = sshra.s32 %s215_s23, 4  ;;  %s432_s28 = scalar_lea.hbm %s634_s1, 16  ;;  %s427_s24 = int_to_ptr.hbm [resolvable:$true] %s426_s24 }
  0x24   : > { %s428_s25 = scalar_lea.hbm %s427_s24, 8  ;;  %p433_p7 = scmp.lt.s32.totalorder %s427_s24, %s634_s1 }
  0x25   : > { %v158_v3 = vmul.f32 %v157_v2, %v155_v0  ;;  %p429_p4 = scmp.ne.s32.totalorder %s427_s24, %s428_s25  ;;  %p434_p8 = scmp.lt.s32.totalorder %s432_s28, %s428_s25 }
  0x27   : > { %v159_v4 = vadd.f32 1.0, %v158_v3  ;;  %p430_p5 = pnand %p429_p4, %p557_p9  ;;  %p435_p10 = por %p434_p8, %p433_p7 }
  0x29   : > { %161 = vst [vmem:[#allocation1] ss:$2 sm:$0xff] %v159_v4  ;;  %p431_p6 = pneg %p430_p5 }
  0x2b   : > { %p436_p13 = pnand %p435_p10, %p431_p6 }
  0x30   : > { %v162_v5 = vld.sshfl [vmem:[#allocation1] sm:$0xff pattern:$0x75316420]  ;;  %v163_v6 = vld.sshfl [vmem:[#allocation1 + $0x8] sm:$0xff pattern:$0x75316420] }
  0x31   : > { %v167_v7 = vsel %vm166_vm0, %v162_v5, 0.0  ;;  %v174_v8 = vsel %vm166_vm0, %v163_v6, 0.0 }
  0x32   : > { %v168_v9 = vrot.slane %v167_v7, 4  ;;  %v175_v10 = vrot.slane %v174_v8, 4 }
  0x34   : > { %v169_v11 = vadd.f32 %v168_v9, %v167_v7  ;;  %v176_v12 = vadd.f32 %v175_v10, %v174_v8 }
  0x36   : > { %v170_v13 = vrot.slane %v169_v11, 2  ;;  %v177_v14 = vrot.slane %v176_v12, 2 }
  0x38   : > { %v171_v15 = vadd.f32 %v170_v13, %v169_v11  ;;  %v178_v16 = vadd.f32 %v177_v14, %v176_v12 }
  0x3a   : > { %v172_v17 = vrot.slane %v171_v15, 1  ;;  %v179_v18 = vrot.slane %v178_v16, 1 }
  0x3c   : > { %v173_v19 = vadd.f32 %v172_v17, %v171_v15  ;;  %v180_v20 = vadd.f32 %v179_v18, %v178_v16 }
  0x3e   : > { %378 = vrcp.f32 %v173_v19 }
  0x3f   : > { %380 = vrcp.f32 %v180_v20 }
  0x44   : > { %v379_v21 = vpop.eup %378 }
  0x45   : > { %v381_v22 = vpop.eup %380  ;;  %v183_v23 = vmul.f32 %v379_v21, %v173_v19 }
  0x46   : > { %v184_v24 = vmul.f32 %v381_v22, %v180_v20 }
  0x47   : > { %v185_v25 = vsub.f32 2.0, %v183_v23 }
  0x48   : > { %v186_v26 = vsub.f32 2.0, %v184_v24 }
  0x49   : > { %v187_v28 = vmul.f32 %v379_v21, %v185_v25 }
  0x4a   : > { %v188_v27 = vmul.f32 %v381_v22, %v186_v26 }
  0x4c   : > { %v191_v29 = vrot.slane %v188_v27, 4 }
  0x4e   : > { %v192_v30 = vsel %vm166_vm0, %v187_v28, %v191_v29 }
  0x4f   : > { %v194_v31 = vmul.f32 %v192_v30, %v159_v4 }
  0x51   : > { %195 = vst [vmem:[%s152_s18] sm:$0xff] %v194_v31 }
  0x52   : > { %439 = shalt.err (!%p436_p13)
}
  0x53   : > { %318 = dma.vmem_to_hbm [thread:$0]  (%p557_p9), %s213_s22, 128, %s215_s23, %s197_s9  }
  0x54 PF: > { %s226_s2 = sand.u32 1, %s474_s6   ;;  %p325_p0 = pnand %p302_p12, %p564_p11 }
  0x55   : > { %s227_s3 = scalar_lea.sflag [#allocation4], %s226_s2 }
  0x56   : > { %p326_p1 = pneg %p325_p0 }
  0x58   : > { %469 = dma.done.wait (%p326_p1), %s227_s3, 128  }
  0x59   : > { %471 = vsyncadd (%p326_p1), %s227_s3, 4294967168  ;;  %s17_s11 = sadd.s32 1, %s494_s11   ;;  %s639_s6 = smov %s478_s7 }
  0x5a   : > { %p14_p2 = scmp.ge.s32.totalorder %s17_s11, 4   ;;  %s640_s7 = smov %s482_s8 }
  0x5b   : > { %s641_s8 = smov %s562_s20  ;;  %s642_s9 = smov %s490_s10 }
  0x5c   : > { %s643_s10 = smov %s645_s14  ;;  %16 = sbr.rel (!%p14_p2) target bundleno = 6 (0x6), region = 69 }
  0x61   :  { %233 = vsyncpa [#allocation3], 1 }
  0x62   :  { %235 = vsyncpa [#allocation3 + $0x1], 1 }
  0x63   :  { %236 = vsyncpa [#allocation4], 1 }
  0x64   :  { %238 = vsyncpa [#allocation4 + $0x1], 1 }

</bundles_post_ra>
